<compile_context>
chip_gen: v6e
topology: v6e:2x2x1
jax: 0.10.0
libtpu: 0.0.40
codegen_flags: <defaults>
</compile_context>

<pallas_src>
import functools
import math

import jax
import jax.numpy as jnp
from jax.experimental import pallas as pl
from jax.experimental.pallas import tpu as pltpu

LEAK = 0.2
BN_EPS = 0.8   # nn.BatchNorm1d(E, 0.8): 2nd positional arg is eps (mirrors the spec verbatim)
_SUBLANE = 8


def _leaky(v):
    # LeakyReLU(0.2): for leak < 1, max(v, leak*v) == leaky_relu(v).
    return jnp.maximum(v, LEAK * v)


def _generator_kernel(n_valid,
                      x_ref, z_ref,
                      wf_ref, bf_ref,
                      w1_ref, b1_ref,
                      w2_ref, b2_ref,
                      w3_ref, b3_ref,
                      g1_ref, be1_ref,
                      g2_ref, be2_ref,
                      out_ref, reg_ref):
    Np, E = out_ref.shape
    inv_n = 1.0 / float(n_valid)

    x = x_ref[...]

    # Row-validity mask — only materialized when the batch was padded.
    if n_valid != Np:
        row = jax.lax.broadcasted_iota(jnp.int32, (Np, 1), 0)
        valid = (row < n_valid).astype(jnp.float32)          # [Np, 1]
    else:
        valid = None

    def masked(v):
        return v if valid is None else v * valid

    # ---- FiLM generator (stand-in for the external `args.filt`): Linear(E, 4E).
    # bf16 operands on the MXU, f32 accumulation.
    # TODO(synk): args.filt is an external module not defined in Generator; modeled
    # here as a single Linear(E, 4E) producing (alpha1, beta1, alpha2, beta2).
    film = jnp.dot(x.astype(jnp.bfloat16), wf_ref[...],
                   preferred_element_type=jnp.float32) + bf_ref[...]
    # E is a multiple of 128 → chunk boundaries are lane-tile aligned (no VMEM copy).
    a1 = film[:, 0 * E:1 * E]
    fb1 = film[:, 1 * E:2 * E]
    a2 = film[:, 2 * E:3 * E]
    fb2 = film[:, 3 * E:4 * E]

    # filt_l2_regularization = (||a1-1||_F + ||a2-1||_F + ||b1||_F + ||b2||_F) / 4
    reg = (jnp.sqrt(jnp.sum(masked(a1 - 1.0) ** 2))
           + jnp.sqrt(jnp.sum(masked(a2 - 1.0) ** 2))
           + jnp.sqrt(jnp.sum(masked(fb1) ** 2))
           + jnp.sqrt(jnp.sum(masked(fb2) ** 2))) * 0.25
    reg_ref[0, 0] = reg                                      # SMEM scalar output

    # ---- y = pos_head + z   (z ~ N(0, 0.01), generated deterministically in wrapper)
    y = x + z_ref[...]

    def batchnorm(h, g_ref, be_ref):
        # Single-pass biased batch statistics (PyTorch BN training mode):
        # var = E[h^2] - mu^2, then fold gamma/rsqrt/mean into row-vector
        # scale/shift so the per-element work is one fma.
        hm = masked(h)
        s = jnp.sum(hm, axis=0, keepdims=True)
        sq = jnp.sum(hm * hm, axis=0, keepdims=True)
        mu = s * inv_n
        var = sq * inv_n - mu * mu
        scale = g_ref[...] * jax.lax.rsqrt(var + BN_EPS)      # [1, E]
        shift = be_ref[...] - mu * scale                      # [1, E]
        return h * scale + shift

    # ---- genMLP1 = Linear + LeakyReLU, then FiLM, BatchNorm1d (batch stats), LeakyReLU
    h = _leaky(jnp.dot(y.astype(jnp.bfloat16), w1_ref[...],
                       preferred_element_type=jnp.float32) + b1_ref[...])
    h = h * a1 + fb1
    h = _leaky(batchnorm(h, g1_ref, be1_ref))

    # ---- genMLP2 = Linear + LeakyReLU, then FiLM, BatchNorm1d, LeakyReLU
    h = _leaky(jnp.dot(h.astype(jnp.bfloat16), w2_ref[...],
                       preferred_element_type=jnp.float32) + b2_ref[...])
    h = h * a2 + fb2
    h = _leaky(batchnorm(h, g2_ref, be2_ref))

    # ---- output = Linear + Tanh
    out = jnp.tanh(jnp.dot(h.astype(jnp.bfloat16), w3_ref[...],
                           preferred_element_type=jnp.float32) + b3_ref[...])
    out_ref[...] = out


def generator_forward(x, z, params):
    N, E = x.shape
    assert E % 128 == 0, "node_embed_size must be a multiple of 128 (lane-aligned FiLM slices)"

    # Pad the batch to a sublane multiple so [N, E] blocks are (8,128)-tileable; the
    # kernel masks BN/reg statistics back to the true N.
    Np = max(_SUBLANE, -(-N // _SUBLANE) * _SUBLANE)
    if Np != N:
        pad = ((0, Np - N), (0, 0))
        x = jnp.pad(x, pad)
        z = jnp.pad(z, pad)

    vmem = pl.BlockSpec(memory_space=pltpu.MemorySpace.VMEM)
    smem = pl.BlockSpec(memory_space=pltpu.MemorySpace.SMEM)

    args = (x, z,
            params["wf"], params["bf"],
            params["w1"], params["b1"],
            params["w2"], params["b2"],
            params["w3"], params["b3"],
            params["g1"], params["be1"],
            params["g2"], params["be2"])

    # Explicit VMEM budget sized to the actual footprint (activations f32, weights
    # bf16) with 2x headroom; clamped to stay under v7x physical VMEM (64 MiB).
    act_bytes = Np * E * 4 * 16                 # x, z, y, film(4 slabs) + views, h's, out
    wgt_bytes = (E * 4 * E + 3 * E * E) * 2 + 12 * E * 4
    vmem_limit = int(min(48 * 1024 * 1024,
                         max(4 * 1024 * 1024, 2 * (act_bytes + wgt_bytes))))

    out, reg = pl.pallas_call(
        functools.partial(_generator_kernel, N),
        out_shape=(jax.ShapeDtypeStruct((Np, E), jnp.float32),
                   jax.ShapeDtypeStruct((1, 1), jnp.float32)),
        in_specs=[vmem] * len(args),
        out_specs=(vmem, smem),
        compiler_params=pltpu.CompilerParams(vmem_limit_bytes=vmem_limit),
    )(*args)
    return out[:N], reg[0, 0]


def init_params(key, E):
    # PyTorch-style uniform(-1/sqrt(fan_in), 1/sqrt(fan_in)) init; weights stored
    # as [in, out] (kernel computes y = x @ W + b) and kept in bf16: weight load
    # is the HBM roofline limiter, and bf16 is the MXU-native input dtype.
    ks = jax.random.split(key, 8)
    lim = 1.0 / math.sqrt(E)
    u = lambda k, shape: jax.random.uniform(k, shape, jnp.float32, -lim, lim)
    return {
        "wf": u(ks[0], (E, 4 * E)).astype(jnp.bfloat16), "bf": u(ks[1], (1, 4 * E)),
        "w1": u(ks[2], (E, E)).astype(jnp.bfloat16),     "b1": u(ks[3], (1, E)),
        "w2": u(ks[4], (E, E)).astype(jnp.bfloat16),     "b2": u(ks[5], (1, E)),
        "w3": u(ks[6], (E, E)).astype(jnp.bfloat16),     "b3": u(ks[7], (1, E)),
        # BatchNorm1d default affine init: gamma=1, beta=0 (kept f32).
        "g1": jnp.ones((1, E), jnp.float32), "be1": jnp.zeros((1, E), jnp.float32),
        "g2": jnp.ones((1, E), jnp.float32), "be2": jnp.zeros((1, E), jnp.float32),
    }


if __name__ == "__main__":
    # Small demo shapes: batch=32, node_embed_size=128 (E=128 keeps FiLM chunk
    # boundaries lane-aligned and is the natural MXU lane width).
    N, E = 32, 128
    key = jax.random.PRNGKey(0)
    k_x, k_z, k_p = jax.random.split(key, 3)

    pos_head = jax.random.normal(k_x, (N, E), jnp.float32)
    z = 0.01 * jax.random.normal(k_z, (N, E), jnp.float32)   # torch.normal(0, 0.01, ...)
    params = init_params(k_p, E)

    out, reg = jax.jit(generator_forward)(pos_head, z, params)
    jax.block_until_ready((out, reg))

    assert out.shape == (N, E) and bool(jnp.all(jnp.isfinite(out)))
    assert bool(jnp.isfinite(reg))
    print("KERNEL_OK")
</pallas_src>

<mosaic_0001>
module attributes {stable_mosaic.version = 11 : i64} {
  func.func @_generator_kernel(%arg0: memref<32x128xf32, #tpu.memory_space<vmem>>, %arg1: memref<32x128xf32, #tpu.memory_space<vmem>>, %arg2: memref<128x512xbf16, #tpu.memory_space<vmem>>, %arg3: memref<1x512xf32, #tpu.memory_space<vmem>>, %arg4: memref<128x128xbf16, #tpu.memory_space<vmem>>, %arg5: memref<1x128xf32, #tpu.memory_space<vmem>>, %arg6: memref<128x128xbf16, #tpu.memory_space<vmem>>, %arg7: memref<1x128xf32, #tpu.memory_space<vmem>>, %arg8: memref<128x128xbf16, #tpu.memory_space<vmem>>, %arg9: memref<1x128xf32, #tpu.memory_space<vmem>>, %arg10: memref<1x128xf32, #tpu.memory_space<vmem>>, %arg11: memref<1x128xf32, #tpu.memory_space<vmem>>, %arg12: memref<1x128xf32, #tpu.memory_space<vmem>>, %arg13: memref<1x128xf32, #tpu.memory_space<vmem>>, %arg14: memref<32x128xf32, #tpu.memory_space<vmem>>, %arg15: memref<1x1xf32, #tpu.memory_space<smem>>) attributes {dimension_semantics = [], scalar_prefetch = 0 : i64, scratch_operands = 0 : i64, tpu.core_type = #tpu.core_type<tc>} {
    %c0 = arith.constant 0 : index
    %c0_0 = arith.constant 0 : index
    %0 = vector.load %arg0[%c0, %c0_0] : memref<32x128xf32, #tpu.memory_space<vmem>>, vector<32x128xf32>
    %1 = arith.truncf %0 : vector<32x128xf32> to vector<32x128xbf16>
    %c0_1 = arith.constant 0 : index
    %c0_2 = arith.constant 0 : index
    %2 = vector.load %arg2[%c0_1, %c0_2] : memref<128x512xbf16, #tpu.memory_space<vmem>>, vector<128x512xbf16>
    %cst = arith.constant dense<0.000000e+00> : vector<32x512xf32>
    %3 = tpu.matmul %1, %2, %cst {dimension_numbers = #tpu.dot_dimension_numbers<[1], [0], [0], [1], [0, 0, 1, 1], [], []>} : vector<32x128xbf16>, vector<128x512xbf16>, vector<32x512xf32> -> vector<32x512xf32>
    %c0_3 = arith.constant 0 : index
    %c0_4 = arith.constant 0 : index
    %4 = vector.load %arg3[%c0_3, %c0_4] : memref<1x512xf32, #tpu.memory_space<vmem>>, vector<1x512xf32>
    %5 = vector.broadcast %4 : vector<1x512xf32> to vector<32x512xf32>
    %6 = arith.addf %3, %5 : vector<32x512xf32>
    %7 = vector.extract_strided_slice %6 {offsets = [0, 0], sizes = [32, 128], strides = [1, 1]} : vector<32x512xf32> to vector<32x128xf32>
    %8 = vector.extract_strided_slice %6 {offsets = [0, 128], sizes = [32, 128], strides = [1, 1]} : vector<32x512xf32> to vector<32x128xf32>
    %9 = vector.extract_strided_slice %6 {offsets = [0, 256], sizes = [32, 128], strides = [1, 1]} : vector<32x512xf32> to vector<32x128xf32>
    %10 = vector.extract_strided_slice %6 {offsets = [0, 384], sizes = [32, 128], strides = [1, 1]} : vector<32x512xf32> to vector<32x128xf32>
    %cst_5 = arith.constant 1.000000e+00 : f32
    %11 = vector.broadcast %cst_5 : f32 to vector<32x128xf32>
    %12 = arith.subf %7, %11 : vector<32x128xf32>
    %13 = arith.mulf %12, %12 : vector<32x128xf32>
    %14 = vector.shape_cast %13 : vector<32x128xf32> to vector<1x32x128xf32>
    %cst_6 = arith.constant dense<0.000000e+00> : vector<1xf32>
    %15 = vector.multi_reduction <add>, %14, %cst_6 [1, 2] : vector<1x32x128xf32> to vector<1xf32>
    %16 = vector.shape_cast %15 : vector<1xf32> to vector<1x1x1xf32>
    %17 = vector.extract %16[0, 0, 0] : f32 from vector<1x1x1xf32>
    %18 = math.sqrt %17 : f32
    %cst_7 = arith.constant 1.000000e+00 : f32
    %19 = vector.broadcast %cst_7 : f32 to vector<32x128xf32>
    %20 = arith.subf %9, %19 : vector<32x128xf32>
    %21 = arith.mulf %20, %20 : vector<32x128xf32>
    %22 = vector.shape_cast %21 : vector<32x128xf32> to vector<1x32x128xf32>
    %cst_8 = arith.constant dense<0.000000e+00> : vector<1xf32>
    %23 = vector.multi_reduction <add>, %22, %cst_8 [1, 2] : vector<1x32x128xf32> to vector<1xf32>
    %24 = vector.shape_cast %23 : vector<1xf32> to vector<1x1x1xf32>
    %25 = vector.extract %24[0, 0, 0] : f32 from vector<1x1x1xf32>
    %26 = math.sqrt %25 : f32
    %27 = arith.addf %18, %26 : f32
    %28 = arith.mulf %8, %8 : vector<32x128xf32>
    %29 = vector.shape_cast %28 : vector<32x128xf32> to vector<1x32x128xf32>
    %cst_9 = arith.constant dense<0.000000e+00> : vector<1xf32>
    %30 = vector.multi_reduction <add>, %29, %cst_9 [1, 2] : vector<1x32x128xf32> to vector<1xf32>
    %31 = vector.shape_cast %30 : vector<1xf32> to vector<1x1x1xf32>
    %32 = vector.extract %31[0, 0, 0] : f32 from vector<1x1x1xf32>
    %33 = math.sqrt %32 : f32
    %34 = arith.addf %27, %33 : f32
    %35 = arith.mulf %10, %10 : vector<32x128xf32>
    %36 = vector.shape_cast %35 : vector<32x128xf32> to vector<1x32x128xf32>
    %cst_10 = arith.constant dense<0.000000e+00> : vector<1xf32>
    %37 = vector.multi_reduction <add>, %36, %cst_10 [1, 2] : vector<1x32x128xf32> to vector<1xf32>
    %38 = vector.shape_cast %37 : vector<1xf32> to vector<1x1x1xf32>
    %39 = vector.extract %38[0, 0, 0] : f32 from vector<1x1x1xf32>
    %40 = math.sqrt %39 : f32
    %41 = arith.addf %34, %40 : f32
    %cst_11 = arith.constant 2.500000e-01 : f32
    %42 = arith.mulf %41, %cst_11 : f32
    %c0_12 = arith.constant 0 : index
    %c0_13 = arith.constant 0 : index
    %43 = memref.load %arg15[%c0_12, %c0_13] : memref<1x1xf32, #tpu.memory_space<smem>>
    memref.store %42, %arg15[%c0_12, %c0_13] : memref<1x1xf32, #tpu.memory_space<smem>>
    %c0_14 = arith.constant 0 : index
    %c0_15 = arith.constant 0 : index
    %44 = vector.load %arg1[%c0_14, %c0_15] : memref<32x128xf32, #tpu.memory_space<vmem>>, vector<32x128xf32>
    %45 = arith.addf %0, %44 : vector<32x128xf32>
    %46 = arith.truncf %45 : vector<32x128xf32> to vector<32x128xbf16>
    %c0_16 = arith.constant 0 : index
    %c0_17 = arith.constant 0 : index
    %47 = vector.load %arg4[%c0_16, %c0_17] : memref<128x128xbf16, #tpu.memory_space<vmem>>, vector<128x128xbf16>
    %cst_18 = arith.constant dense<0.000000e+00> : vector<32x128xf32>
    %48 = tpu.matmul %46, %47, %cst_18 {dimension_numbers = #tpu.dot_dimension_numbers<[1], [0], [0], [1], [0, 0, 1, 1], [], []>} : vector<32x128xbf16>, vector<128x128xbf16>, vector<32x128xf32> -> vector<32x128xf32>
    %c0_19 = arith.constant 0 : index
    %c0_20 = arith.constant 0 : index
    %49 = vector.load %arg5[%c0_19, %c0_20] : memref<1x128xf32, #tpu.memory_space<vmem>>, vector<1x128xf32>
    %50 = vector.broadcast %49 : vector<1x128xf32> to vector<32x128xf32>
    %51 = arith.addf %48, %50 : vector<32x128xf32>
    %cst_21 = arith.constant 2.000000e-01 : f32
    %52 = vector.broadcast %cst_21 : f32 to vector<32x128xf32>
    %53 = arith.mulf %52, %51 : vector<32x128xf32>
    %54 = arith.maximumf %51, %53 : vector<32x128xf32>
    %55 = arith.mulf %54, %7 : vector<32x128xf32>
    %56 = arith.addf %55, %8 : vector<32x128xf32>
    %cst_22 = arith.constant dense<0.000000e+00> : vector<128xf32>
    %57 = vector.multi_reduction <add>, %56, %cst_22 [0] : vector<32x128xf32> to vector<128xf32>
    %58 = vector.shape_cast %57 : vector<128xf32> to vector<1x128xf32>
    %59 = arith.mulf %56, %56 : vector<32x128xf32>
    %cst_23 = arith.constant dense<0.000000e+00> : vector<128xf32>
    %60 = vector.multi_reduction <add>, %59, %cst_23 [0] : vector<32x128xf32> to vector<128xf32>
    %61 = vector.shape_cast %60 : vector<128xf32> to vector<1x128xf32>
    %cst_24 = arith.constant 3.125000e-02 : f32
    %62 = vector.broadcast %cst_24 : f32 to vector<1x128xf32>
    %63 = arith.mulf %58, %62 : vector<1x128xf32>
    %cst_25 = arith.constant 3.125000e-02 : f32
    %64 = vector.broadcast %cst_25 : f32 to vector<1x128xf32>
    %65 = arith.mulf %61, %64 : vector<1x128xf32>
    %66 = arith.mulf %63, %63 : vector<1x128xf32>
    %67 = arith.subf %65, %66 : vector<1x128xf32>
    %c0_26 = arith.constant 0 : index
    %c0_27 = arith.constant 0 : index
    %68 = vector.load %arg10[%c0_26, %c0_27] : memref<1x128xf32, #tpu.memory_space<vmem>>, vector<1x128xf32>
    %cst_28 = arith.constant 8.000000e-01 : f32
    %69 = vector.broadcast %cst_28 : f32 to vector<1x128xf32>
    %70 = arith.addf %67, %69 : vector<1x128xf32>
    %71 = math.rsqrt %70 : vector<1x128xf32>
    %72 = arith.mulf %68, %71 : vector<1x128xf32>
    %c0_29 = arith.constant 0 : index
    %c0_30 = arith.constant 0 : index
    %73 = vector.load %arg11[%c0_29, %c0_30] : memref<1x128xf32, #tpu.memory_space<vmem>>, vector<1x128xf32>
    %74 = arith.mulf %63, %72 : vector<1x128xf32>
    %75 = arith.subf %73, %74 : vector<1x128xf32>
    %76 = vector.broadcast %72 : vector<1x128xf32> to vector<32x128xf32>
    %77 = arith.mulf %56, %76 : vector<32x128xf32>
    %78 = vector.broadcast %75 : vector<1x128xf32> to vector<32x128xf32>
    %79 = arith.addf %77, %78 : vector<32x128xf32>
    %cst_31 = arith.constant 2.000000e-01 : f32
    %80 = vector.broadcast %cst_31 : f32 to vector<32x128xf32>
    %81 = arith.mulf %80, %79 : vector<32x128xf32>
    %82 = arith.maximumf %79, %81 : vector<32x128xf32>
    %83 = arith.truncf %82 : vector<32x128xf32> to vector<32x128xbf16>
    %c0_32 = arith.constant 0 : index
    %c0_33 = arith.constant 0 : index
    %84 = vector.load %arg6[%c0_32, %c0_33] : memref<128x128xbf16, #tpu.memory_space<vmem>>, vector<128x128xbf16>
    %cst_34 = arith.constant dense<0.000000e+00> : vector<32x128xf32>
    %85 = tpu.matmul %83, %84, %cst_34 {dimension_numbers = #tpu.dot_dimension_numbers<[1], [0], [0], [1], [0, 0, 1, 1], [], []>} : vector<32x128xbf16>, vector<128x128xbf16>, vector<32x128xf32> -> vector<32x128xf32>
    %c0_35 = arith.constant 0 : index
    %c0_36 = arith.constant 0 : index
    %86 = vector.load %arg7[%c0_35, %c0_36] : memref<1x128xf32, #tpu.memory_space<vmem>>, vector<1x128xf32>
    %87 = vector.broadcast %86 : vector<1x128xf32> to vector<32x128xf32>
    %88 = arith.addf %85, %87 : vector<32x128xf32>
    %cst_37 = arith.constant 2.000000e-01 : f32
    %89 = vector.broadcast %cst_37 : f32 to vector<32x128xf32>
    %90 = arith.mulf %89, %88 : vector<32x128xf32>
    %91 = arith.maximumf %88, %90 : vector<32x128xf32>
    %92 = arith.mulf %91, %9 : vector<32x128xf32>
    %93 = arith.addf %92, %10 : vector<32x128xf32>
    %cst_38 = arith.constant dense<0.000000e+00> : vector<128xf32>
    %94 = vector.multi_reduction <add>, %93, %cst_38 [0] : vector<32x128xf32> to vector<128xf32>
    %95 = vector.shape_cast %94 : vector<128xf32> to vector<1x128xf32>
    %96 = arith.mulf %93, %93 : vector<32x128xf32>
    %cst_39 = arith.constant dense<0.000000e+00> : vector<128xf32>
    %97 = vector.multi_reduction <add>, %96, %cst_39 [0] : vector<32x128xf32> to vector<128xf32>
    %98 = vector.shape_cast %97 : vector<128xf32> to vector<1x128xf32>
    %cst_40 = arith.constant 3.125000e-02 : f32
    %99 = vector.broadcast %cst_40 : f32 to vector<1x128xf32>
    %100 = arith.mulf %95, %99 : vector<1x128xf32>
    %cst_41 = arith.constant 3.125000e-02 : f32
    %101 = vector.broadcast %cst_41 : f32 to vector<1x128xf32>
    %102 = arith.mulf %98, %101 : vector<1x128xf32>
    %103 = arith.mulf %100, %100 : vector<1x128xf32>
    %104 = arith.subf %102, %103 : vector<1x128xf32>
    %c0_42 = arith.constant 0 : index
    %c0_43 = arith.constant 0 : index
    %105 = vector.load %arg12[%c0_42, %c0_43] : memref<1x128xf32, #tpu.memory_space<vmem>>, vector<1x128xf32>
    %cst_44 = arith.constant 8.000000e-01 : f32
    %106 = vector.broadcast %cst_44 : f32 to vector<1x128xf32>
    %107 = arith.addf %104, %106 : vector<1x128xf32>
    %108 = math.rsqrt %107 : vector<1x128xf32>
    %109 = arith.mulf %105, %108 : vector<1x128xf32>
    %c0_45 = arith.constant 0 : index
    %c0_46 = arith.constant 0 : index
    %110 = vector.load %arg13[%c0_45, %c0_46] : memref<1x128xf32, #tpu.memory_space<vmem>>, vector<1x128xf32>
    %111 = arith.mulf %100, %109 : vector<1x128xf32>
    %112 = arith.subf %110, %111 : vector<1x128xf32>
    %113 = vector.broadcast %109 : vector<1x128xf32> to vector<32x128xf32>
    %114 = arith.mulf %93, %113 : vector<32x128xf32>
    %115 = vector.broadcast %112 : vector<1x128xf32> to vector<32x128xf32>
    %116 = arith.addf %114, %115 : vector<32x128xf32>
    %cst_47 = arith.constant 2.000000e-01 : f32
    %117 = vector.broadcast %cst_47 : f32 to vector<32x128xf32>
    %118 = arith.mulf %117, %116 : vector<32x128xf32>
    %119 = arith.maximumf %116, %118 : vector<32x128xf32>
    %120 = arith.truncf %119 : vector<32x128xf32> to vector<32x128xbf16>
    %c0_48 = arith.constant 0 : index
    %c0_49 = arith.constant 0 : index
    %121 = vector.load %arg8[%c0_48, %c0_49] : memref<128x128xbf16, #tpu.memory_space<vmem>>, vector<128x128xbf16>
    %cst_50 = arith.constant dense<0.000000e+00> : vector<32x128xf32>
    %122 = tpu.matmul %120, %121, %cst_50 {dimension_numbers = #tpu.dot_dimension_numbers<[1], [0], [0], [1], [0, 0, 1, 1], [], []>} : vector<32x128xbf16>, vector<128x128xbf16>, vector<32x128xf32> -> vector<32x128xf32>
    %c0_51 = arith.constant 0 : index
    %c0_52 = arith.constant 0 : index
    %123 = vector.load %arg9[%c0_51, %c0_52] : memref<1x128xf32, #tpu.memory_space<vmem>>, vector<1x128xf32>
    %124 = vector.broadcast %123 : vector<1x128xf32> to vector<32x128xf32>
    %125 = arith.addf %122, %124 : vector<32x128xf32>
    %126 = math.tanh %125 : vector<32x128xf32>
    %c0_53 = arith.constant 0 : index
    %c0_54 = arith.constant 0 : index
    %127 = vector.load %arg14[%c0_53, %c0_54] : memref<32x128xf32, #tpu.memory_space<vmem>>, vector<32x128xf32>
    tpu.vector_store %arg14[%c0_53, %c0_54], %126 {strides = array<i32>} : memref<32x128xf32, #tpu.memory_space<vmem>>, vector<32x128xf32>,
    return
  }
}

</mosaic_0001>

<bundles_post_ra>
// kernel: generator_forward.1
= control target key start
LH: loop header
LB: loop body
LE: loop exit
PB: predicated region body
PF: predicated region fallthrough
CT: control target
= control target key end

     0   :  { %21 = vsyncpa [#allocation3], 0  ;;  %s1866_s0 = inlined_call_operand.hbm [shape: f32[32,128], index: 0, kind: input, shape index: {}]   ;;  %s1867_s1 = inlined_call_operand.hbm [shape: f32[32,128], index: 1, kind: input, shape index: {}]   ;;  %s1868_s2 = inlined_call_operand.hbm [shape: bf16[128,512], index: 2, kind: input, shape index: {}]   ;;  %s1869_s3 = inlined_call_operand.vmem [shape: f32[1,512], index: 3, kind: input, shape index: {}]   ;;  %s1870_s4 = inlined_call_operand.hbm [shape: bf16[128,128], index: 4, kind: input, shape index: {}]   ;;  %s1871_s5 = inlined_call_operand.vmem [shape: f32[1,128], index: 5, kind: input, shape index: {}]   ;;  %s1872_s6 = inlined_call_operand.hbm [shape: bf16[128,128], index: 6, kind: input, shape index: {}]   ;;  %s1873_s7 = inlined_call_operand.vmem [shape: f32[1,128], index: 7, kind: input, shape index: {}]   ;;  %s1874_s8 = inlined_call_operand.hbm [shape: bf16[128,128], index: 8, kind: input, shape index: {}]   ;;  %s1875_s9 = inlined_call_operand.vmem [shape: f32[1,128], index: 9, kind: input, shape index: {}]   ;;  %s1876_s10 = inlined_call_operand.vmem [shape: f32[1,128], index: 10, kind: input, shape index: {}]   ;;  %s1877_s11 = inlined_call_operand.vmem [shape: f32[1,128], index: 11, kind: input, shape index: {}]   ;;  %s1878_s12 = inlined_call_operand.vmem [shape: f32[1,128], index: 12, kind: input, shape index: {}]   ;;  %s1879_s13 = inlined_call_operand.hbm [shape: f32[1,128], index: 13, kind: input, shape index: {}]   ;;  %s1880_s14 = inlined_call_operand.hbm [shape: f32[32,128], index: 14, kind: output, shape index: {0}]   ;;  %s1881_s15 = inlined_call_operand.hbm [shape: f32[1,1], index: 15, kind: output, shape index: {1}]  }
   0x1   :  { %22 = vsyncpa [#allocation7], 0 }
   0x2   :  { %23 = vsyncpa [#allocation10], 0 }
   0x3   :  { %24 = vsyncpa [#allocation13], 0 }
   0x4   :  { %25 = vsyncpa [#allocation4], 0 }
   0x5   :  { %26 = vsyncpa [#allocation5], 0  ;;  %s1615_s18 = smov [#allocation6]   ;;  %s1616_s20 = smov [#allocation9]  }
   0x6   :  { %s44_s19 = sshll.u32 %s1615_s18, 4  ;;  %s70_s21 = sshll.u32 %s1616_s20, 4  ;;  %s45_s19 = int_to_ptr.vmem [resolvable:$true] %s44_s19  ;;  %s71_s21 = int_to_ptr.vmem [resolvable:$true] %s70_s21 }
   0x7   :  { %s1443_s22 = scalar_lea.vmem %s45_s19, 512  ;;  %p1448_p1 = scmp.lt.s32.totalorder %s45_s19, %s45_s19 }
   0x8   :  { %p1444_p0 = scmp.ne.s32.totalorder %s45_s19, %s1443_s22  ;;  %p1449_p2 = scmp.lt.s32.totalorder %s1443_s22, %s1443_s22 }
   0xa   :  { %p1450_p3 = por %p1449_p2, %p1448_p1 }
   0xc   :  { %p1451_p4 = pnand %p1450_p3, %p1444_p0 }
   0xe   :  { %1454 = shalt.err (!%p1451_p4)
}
   0xf   :  { %s1617_s23 = smov 128   ;;  %s1618_s24 = smov 8  }
  0x10   :  { %50 = dma.hbm_to_vmem [thread:$0]  %s1867_s1, 512, %s45_s19, [#allocation7], %s1617_s23, %s1617_s23, %s1618_s24  }
  0x11   :  { %s1463_s27 = scalar_lea.vmem %s71_s21, 1024  ;;  %p1468_p6 = scmp.lt.s32.totalorder %s71_s21, %s71_s21 }
  0x12   :  { %p1464_p5 = scmp.ne.s32.totalorder %s71_s21, %s1463_s27  ;;  %p1469_p7 = scmp.lt.s32.totalorder %s1463_s27, %s1463_s27 }
  0x14   :  { %p1470_p8 = por %p1469_p7, %p1468_p6 }
  0x16   :  { %p1471_p9 = pnand %p1470_p8, %p1464_p5 }
  0x18   :  { %1474 = shalt.err (!%p1471_p9)
}
  0x19   :  { %s1619_s28 = smov 64   ;;  %s1620_s29 = smov 4  }
  0x1a   :  { %76 = dma.hbm_to_vmem [thread:$0]  %s1870_s4, 1024, %s71_s21, [#allocation10], %s1619_s28, %s1619_s28, %s1620_s29  }
  0x1b   :  { %s1621_s17 = smov [#allocation12]   ;;  %s1622_s20 = smov [#allocation2]  }
  0x1c   :  { %s98_s18 = sshll.u32 %s1621_s17, 4  ;;  %s32_s1 = sshll.u32 %s1622_s20, 4  ;;  %s99_s18 = int_to_ptr.vmem [resolvable:$true] %s98_s18  ;;  %s33_s1 = int_to_ptr.vmem [resolvable:$true] %s32_s1 }
  0x1d   :  { %s1483_s19 = scalar_lea.vmem %s99_s18, 1024  ;;  %p1488_p11 = scmp.lt.s32.totalorder %s99_s18, %s99_s18 }
  0x1e   :  { %p1484_p10 = scmp.ne.s32.totalorder %s99_s18, %s1483_s19  ;;  %p1489_p12 = scmp.lt.s32.totalorder %s1483_s19, %s1483_s19 }
  0x20   :  { %p1490_p13 = por %p1489_p12, %p1488_p11 }
  0x22   :  { %p1491_p0 = pnand %p1490_p13, %p1484_p10 }
  0x24   :  { %1494 = shalt.err (!%p1491_p0)
}
  0x25   :  { %104 = dma.hbm_to_vmem [thread:$0]  %s1874_s8, 1024, %s99_s18, [#allocation13], %s1619_s28, %s1619_s28, %s1620_s29  }
  0x26   :  { %s1503_s4 = scalar_lea.vmem %s33_s1, 512  ;;  %p1508_p2 = scmp.lt.s32.totalorder %s33_s1, %s33_s1 }
  0x27   :  { %p1504_p1 = scmp.ne.s32.totalorder %s33_s1, %s1503_s4  ;;  %p1509_p3 = scmp.lt.s32.totalorder %s1503_s4, %s1503_s4 }
  0x29   :  { %p1510_p4 = por %p1509_p3, %p1508_p2 }
  0x2b   :  { %p1511_p5 = pnand %p1510_p4, %p1504_p1 }
  0x2d   :  { %1514 = shalt.err (!%p1511_p5)
}
  0x2e   :  { %38 = dma.hbm_to_vmem [thread:$0]  %s1866_s0, 512, %s33_s1, [#allocation3], %s1617_s23, %s1617_s23, %s1618_s24  }
  0x2f   :  { %s1623_s27 = smov [#allocation8]  }
  0x30   :  { %s56_s30 = sshll.u32 %s1623_s27, 4  ;;  %s57_s30 = int_to_ptr.vmem [resolvable:$true] %s56_s30 }
  0x31   :  { %s1523_s16 = scalar_lea.vmem %s57_s30, 4096  ;;  %p1528_p7 = scmp.lt.s32.totalorder %s57_s30, %s57_s30 }
  0x32   :  { %p1524_p6 = scmp.ne.s32.totalorder %s57_s30, %s1523_s16  ;;  %p1529_p8 = scmp.lt.s32.totalorder %s1523_s16, %s1523_s16 }
  0x34   :  { %p1530_p9 = por %p1529_p8, %p1528_p7 }
  0x36   :  { %p1531_p10 = pnand %p1530_p9, %p1524_p6 }
  0x38   :  { %1534 = shalt.err (!%p1531_p10)
}
  0x39   :  { %s1624_s8 = smov 256   ;;  %s1625_s17 = smov 16  }
  0x3a   :  { %62 = dma.hbm_to_vmem [thread:$0]  %s1868_s2, 4096, %s57_s30, [#allocation7], %s1624_s8, %s1624_s8, %s1625_s17  }
  0x3b   :  { %s1626_s19 = smov [#allocation11]   ;;  %s1627_s0 = smov [#allocation14]  }
  0x3c   :  { %s84_s22 = sshll.u32 %s1626_s19, 4  ;;  %s119_s1 = sshll.u32 %s1627_s0, 4  ;;  %s85_s22 = int_to_ptr.vmem [resolvable:$true] %s84_s22  ;;  %s120_s1 = int_to_ptr.vmem [resolvable:$true] %s119_s1 }
  0x3d   :  { %s1543_s25 = scalar_lea.vmem %s85_s22, 1024  ;;  %p1548_p12 = scmp.lt.s32.totalorder %s85_s22, %s85_s22 }
  0x3e   :  { %p1544_p11 = scmp.ne.s32.totalorder %s85_s22, %s1543_s25  ;;  %p1549_p13 = scmp.lt.s32.totalorder %s1543_s25, %s1543_s25 }
  0x40   :  { %p1550_p0 = por %p1549_p13, %p1548_p12 }
  0x42   :  { %p1551_p1 = pnand %p1550_p0, %p1544_p11 }
  0x44   :  { %1554 = shalt.err (!%p1551_p1)
}
  0x45   :  { %90 = dma.hbm_to_vmem [thread:$0]  %s1872_s6, 1024, %s85_s22, [#allocation10], %s1619_s28, %s1619_s28, %s1620_s29  }
  0x46   :  { %s1563_s2 = scalar_lea.vmem %s120_s1, 16  ;;  %s1567_s26 = scalar_lea.vmem %s120_s1, 32 }
  0x47   :  { %p1564_p2 = scmp.ne.s32.totalorder %s120_s1, %s1563_s2  ;;  %p1568_p3 = scmp.lt.s32.totalorder %s120_s1, %s120_s1 }
  0x48   :  { %p1569_p4 = scmp.lt.s32.totalorder %s1567_s26, %s1563_s2 }
  0x4a   :  { %p1570_p5 = por %p1569_p4, %p1568_p3 }
  0x4c   :  { %p1571_p6 = pnand %p1570_p5, %p1564_p2 }
  0x4e   :  { %1574 = shalt.err (!%p1571_p6)
}
  0x4f   :  { %122 = dma.hbm_to_vmem [thread:$0]  %s1879_s13, 16, %s120_s1, [#allocation13]  }
  0x50   :  { %1603 = dma.done.wait [#allocation3], 512  }
  0x51   :  { %1604 = vsyncadd [#allocation3], 4294966784 }
  0x52   :  { %1605 = dma.done.wait [#allocation7], 4608  }
  0x53   :  { %1606 = vsyncadd [#allocation7], 4294962688 }
  0x54   :  { %1607 = dma.done.wait [#allocation10], 2048  }
  0x55   :  { %1608 = vsyncadd [#allocation10], 4294965248 }
  0x56   :  { %1609 = dma.done.wait [#allocation13], 1040  }
  0x57   :  { %1610 = vsyncadd [#allocation13], 4294966256  ;;  %v1628_v0 = vmov 0   ;;  %v1343_v1 = vld [vmem:[#allocation8 + $0xe4] ss:$16 sps:$4 sm:$0xff]   ;;  %v146_v23 = vld [vmem:[#allocation2 + $0x8] sm:$0xff] }
  0x58   :  { %397 = vmatprep.mubr.bf16.mxu0 %v1628_v0  ;;  %450 = vmatprep.mubr.bf16.mxu1 %v1628_v0  ;;  %v1345_v2 = vld [vmem:[#allocation8 + $0xe0] ss:$16 sps:$4 sm:$0xff]   ;;  %v1346_v3 = vld [vmem:[#allocation8 + $0xc4] ss:$16 sps:$4 sm:$0xff]   ;;  %v1375_v14 = vld [vmem:[#allocation8 + $0xec] ss:$16 sps:$4 sm:$0xff]  }
  0x59   :  { %365 = vmatprep.subr.bf16.mxu0 %v1343_v1  ;;  %v1348_v4 = vld [vmem:[#allocation8 + $0xc0] ss:$16 sps:$4 sm:$0xff]   ;;  %v1349_v5 = vld [vmem:[#allocation8 + $0xa4] ss:$16 sps:$4 sm:$0xff]   ;;  %v1377_v15 = vld [vmem:[#allocation8 + $0xe8] ss:$16 sps:$4 sm:$0xff]   ;;  %418 = vmatprep.subr.bf16.mxu1 %v1375_v14  ;;  %v185_v1 = vlaneseq }
  0x5a   :  { %366 = vmatpush1.bf16.msra.mxu0 %v1345_v2  ;;  %v1351_v6 = vld [vmem:[#allocation8 + $0xa0] ss:$16 sps:$4 sm:$0xff]   ;;  %v1352_v7 = vld [vmem:[#allocation8 + $0x84] ss:$16 sps:$4 sm:$0xff]   ;;  %v1378_v17 = vld [vmem:[#allocation8 + $0xcc] ss:$16 sps:$4 sm:$0xff]   ;;  %419 = vmatpush1.bf16.msra.mxu1 %v1377_v15 }
  0x5b   :  { %367 = vmatprep.subr.bf16.mxu0 %v1346_v3  ;;  %v1354_v8 = vld [vmem:[#allocation8 + $0x80] ss:$16 sps:$4 sm:$0xff]   ;;  %v1355_v9 = vld [vmem:[#allocation8 + $0x64] ss:$16 sps:$4 sm:$0xff]   ;;  %v1380_v19 = vld [vmem:[#allocation8 + $0xc8] ss:$16 sps:$4 sm:$0xff]   ;;  %420 = vmatprep.subr.bf16.mxu1 %v1378_v17 }
  0x5c   :  { %v1357_v10 = vld [vmem:[#allocation8 + $0x60] ss:$16 sps:$4 sm:$0xff]   ;;  %v1358_v11 = vld [vmem:[#allocation8 + $0x44] ss:$16 sps:$4 sm:$0xff]   ;;  %v1381_v21 = vld [vmem:[#allocation8 + $0xac] ss:$16 sps:$4 sm:$0xff]  }
  0x5d   :  { %v1360_v12 = vld [vmem:[#allocation8 + $0x40] ss:$16 sps:$4 sm:$0xff]   ;;  %v1361_v13 = vld [vmem:[#allocation8 + $0x24] ss:$16 sps:$4 sm:$0xff]   ;;  %v1367_v24 = vld [vmem:[#allocation9 + $0x38] sm:$0xff]   ;;  %v186_v2 = vshrl.u32 %v185_v1, 7 }
  0x5e   :  { %368 = vmatpush1.bf16.msra.mxu0 %v1348_v4  ;;  %v1363_v16 = vld [vmem:[#allocation8 + $0x20] ss:$16 sps:$4 sm:$0xff]   ;;  %v1364_v18 = vld [vmem:[#allocation8 + $0x4] ss:$16 sps:$4 sm:$0xff]   ;;  %421 = vmatpush1.bf16.msra.mxu1 %v1380_v19  ;;  %v1383_v25 = vld [vmem:[#allocation8 + $0xa8] ss:$16 sps:$4 sm:$0xff]  }
  0x5f   :  { %369 = vmatprep.subr.bf16.mxu0 %v1349_v5  ;;  %v1366_v20 = vld [vmem:[#allocation8] ss:$16 sps:$4 sm:$0xff]   ;;  %422 = vmatprep.subr.bf16.mxu1 %v1381_v21  ;;  %v1384_v29 = vld [vmem:[#allocation8 + $0x8c] ss:$16 sps:$4 sm:$0xff]   ;;  %v1386_v31 = vld [vmem:[#allocation8 + $0x88] ss:$16 sps:$4 sm:$0xff]  }
  0x60   :  { %v145_v22 = vld [vmem:[#allocation2] sm:$0xff]  ;;  %v1368_v27 = vld [vmem:[#allocation9 + $0x30] sm:$0xff]   ;;  %v586_v30 = vld [vmem:[#allocation6 + $0x8] sm:$0xff]  ;;  %v1751_v3 = vsub.s32 0, %v186_v2  ;;  %s1629_s27 = smov [#allocation16]  }
  0x61   :  { %v149_v26 = vpack.c.bf16 %v146_v23, %v145_v22  ;;  %v585_v28 = vld [vmem:[#allocation6] sm:$0xff]  ;;  %v1387_v32 = vld [vmem:[#allocation8 + $0x6c] ss:$16 sps:$4 sm:$0xff]   ;;  %v147_v33 = vld [vmem:[#allocation2 + $0x10] sm:$0xff]  ;;  %v590_v37 = vadd.f32 %v586_v30, %v146_v23 }
  0x62   :  { %370 = vmatpush1.bf16.msra.mxu0 %v1351_v6  ;;  %v148_v34 = vld [vmem:[#allocation2 + $0x18] sm:$0xff]  ;;  %423 = vmatpush1.bf16.msra.mxu1 %v1383_v25  ;;  %v1369_v35 = vld [vmem:[#allocation9 + $0x28] sm:$0xff]   ;;  %v589_v36 = vadd.f32 %v585_v28, %v145_v22  ;;  %v1370_v41 = vld [vmem:[#allocation9 + $0x20] sm:$0xff]  }
  0x63   :  { %371 = vmatprep.subr.bf16.mxu0 %v1352_v7  ;;  %424 = vmatprep.subr.bf16.mxu1 %v1384_v29  ;;  %v1389_v38 = vld [vmem:[#allocation8 + $0x68] ss:$16 sps:$4 sm:$0xff]   ;;  %v1390_v39 = vld [vmem:[#allocation8 + $0x4c] ss:$16 sps:$4 sm:$0xff]   ;;  %v150_v40 = vpack.c.bf16 %v148_v34, %v147_v33  ;;  %v1372_v48 = vld [vmem:[#allocation9 + $0x10] sm:$0xff]   ;;  %v191_v7 = vsub.s32 1, %v186_v2 }
  0x64   :  { %v593_v42 = vpack.c.bf16 %v590_v37, %v589_v36  ;;  %v1392_v43 = vld [vmem:[#allocation8 + $0x48] ss:$16 sps:$4 sm:$0xff]   ;;  %v1393_v44 = vld [vmem:[#allocation8 + $0x2c] ss:$16 sps:$4 sm:$0xff]   ;;  %v587_v51 = vld [vmem:[#allocation6 + $0x10] sm:$0xff] }
  0x65   :  { %v1371_v45 = vld [vmem:[#allocation9 + $0x18] sm:$0xff]   ;;  %v1373_v50 = vld [vmem:[#allocation9 + $0x8] sm:$0xff]   ;;  %v1374_v53 = vld [vmem:[#allocation9] sm:$0xff]   ;;  %v591_v54 = vadd.f32 %v587_v51, %v147_v33 }
  0x66   :  { %372 = vmatpush1.bf16.msra.mxu0 %v1354_v8  ;;  %425 = vmatpush1.bf16.msra.mxu1 %v1386_v31  ;;  %v1395_v46 = vld [vmem:[#allocation8 + $0x28] ss:$16 sps:$4 sm:$0xff]   ;;  %v1396_v47 = vld [vmem:[#allocation8 + $0xc] ss:$16 sps:$4 sm:$0xff]   ;;  %v1400_v58 = vld [vmem:[#allocation11 + $0x30] sm:$0xff]  }
  0x67   :  { %373 = vmatprep.subr.bf16.mxu0 %v1355_v9  ;;  %426 = vmatprep.subr.bf16.mxu1 %v1387_v32  ;;  %v1398_v49 = vld [vmem:[#allocation8 + $0x8] ss:$16 sps:$4 sm:$0xff]   ;;  %v1402_v60 = vld [vmem:[#allocation11 + $0x20] sm:$0xff]   ;;  %v1404_v62 = vld [vmem:[#allocation11 + $0x10] sm:$0xff]   ;;  %v195_v32 = vsub.s32 2, %v186_v2 }
  0x68   :  { %v588_v52 = vld [vmem:[#allocation6 + $0x18] sm:$0xff]  ;;  %v1401_v59 = vld [vmem:[#allocation11 + $0x28] sm:$0xff]   ;;  %v183_v4 = vld [vmem:[%s1869_s3] sm:$0xf] }
  0x69   :  { %v592_v55 = vadd.f32 %v588_v52, %v148_v34  ;;  %v1399_v57 = vld [vmem:[#allocation11 + $0x38] sm:$0xff]   ;;  %v1405_v63 = vld [vmem:[#allocation11 + $0x8] sm:$0xff]   ;;  %v188_v5 = vrot.slane %v183_v4, %v1751_v3 }
  0x6a   :  { %374 = vmatpush1.bf16.msra.mxu0 %v1357_v10  ;;  %427 = vmatpush1.bf16.msra.mxu1 %v1389_v38  ;;  %v1403_v61 = vld [vmem:[#allocation11 + $0x18] sm:$0xff]  }
  0x6b   :  { %375 = vmatprep.subr.bf16.mxu0 %v1358_v11  ;;  %428 = vmatprep.subr.bf16.mxu1 %v1390_v39  ;;  %v594_v56 = vpack.c.bf16 %v592_v55, %v591_v54  ;;  %v192_v11 = vrot.slane %v183_v4, %v191_v7 }
  0x6e   :  { %376 = vmatpush1.bf16.msra.mxu0 %v1360_v12  ;;  %429 = vmatpush1.bf16.msra.mxu1 %v1392_v43 }
  0x6f   :  { %377 = vmatprep.subr.bf16.mxu0 %v1361_v13  ;;  %430 = vmatprep.subr.bf16.mxu1 %v1393_v44  ;;  %v196_v44 = vrot.slane %v183_v4, %v195_v32 }
  0x72   :  { %378 = vmatpush1.bf16.msra.mxu0 %v1363_v16  ;;  %431 = vmatpush1.bf16.msra.mxu1 %v1395_v46 }
  0x73   :  { %379 = vmatprep.subr.bf16.mxu0 %v1364_v18  ;;  %432 = vmatprep.subr.bf16.mxu1 %v1396_v47 }
  0x76   :  { %380 = vmatpush1.bf16.msra.mxu0 %v1366_v20  ;;  %433 = vmatpush1.bf16.msra.mxu1 %v1398_v49 }
  0x77   :  { %1251 = vmatprep.subr.bf16.mxu0 %v1367_v24  ;;  %1271 = vmatprep.subr.bf16.mxu1 %v1399_v57 }
  0x79   :  { %398 = vmatmul.mubr.bf16.vlgmr.msra.gmra.mxu0 %v149_v26  ;;  %451 = vmatmul.mubr.bf16.vlgmr.msra.gmra.mxu1 %v149_v26 }
  0x7a   :  { %1252 = vmatpush3.bf16.msra.mxu0 %v1367_v24  ;;  %407 = vmatprep.mubr.bf16.mxu0 %v1628_v0 }
  0x7b   :  { %1253 = vmatprep.subr.bf16.mxu0 %v1368_v27  ;;  %460 = vmatprep.mubr.bf16.mxu1 %v1628_v0  ;;  %v1406_v0 = vld [vmem:[#allocation11] sm:$0xff]  }
  0x7c   :  { %1272 = vmatpush3.bf16.msra.mxu1 %v1399_v57 }
  0x7d   :  { %1273 = vmatprep.subr.bf16.mxu1 %v1400_v58 }
  0x7e   :  { %1254 = vmatpush3.bf16.msra.mxu0 %v1368_v27 }
  0x7f   :  { %1255 = vmatprep.subr.bf16.mxu0 %v1369_v35 }
  0x80   :  { %1274 = vmatpush3.bf16.msra.mxu1 %v1400_v58 }
  0x81   :  { %408 = vmatmul.mubr.bf16.gmra.mxu0 %v150_v40  ;;  %461 = vmatmul.mubr.bf16.gmra.mxu1 %v150_v40 }
  0x82   :  { %1256 = vmatpush3.bf16.msra.mxu0 %v1369_v35  ;;  %1267 = vmatprep.mubr.bf16.mxu0 %v593_v42 }
  0x83   :  { %1257 = vmatprep.subr.bf16.mxu0 %v1370_v41  ;;  %1275 = vmatprep.subr.bf16.mxu1 %v1401_v59 }
  0x84   :  { %1276 = vmatpush3.bf16.msra.mxu1 %v1401_v59 }
  0x85   :  { %1277 = vmatprep.subr.bf16.mxu1 %v1402_v60 }
  0x86   :  { %1258 = vmatpush3.bf16.msra.mxu0 %v1370_v41  ;;  %v199_v41 = vsub.s32 3, %v186_v2 }
  0x87   :  { %1259 = vmatprep.subr.bf16.mxu0 %v1371_v45 }
  0x88   :  { %1278 = vmatpush3.bf16.msra.mxu1 %v1402_v60  ;;  %v200_v46 = vrot.slane %v183_v4, %v199_v41 }
  0x89   :  { %1279 = vmatprep.subr.bf16.mxu1 %v1403_v61 }
  0x8a   :  { %1260 = vmatpush3.bf16.msra.mxu0 %v1371_v45 }
  0x8b   :  { %1261 = vmatprep.subr.bf16.mxu0 %v1372_v48 }
  0x8c   :  { %1280 = vmatpush3.bf16.msra.mxu1 %v1403_v61 }
  0x8d   :  { %1281 = vmatprep.subr.bf16.mxu1 %v1404_v62 }
  0x8e   :  { %1262 = vmatpush3.bf16.msra.mxu0 %v1372_v48 }
  0x8f   :  { %1263 = vmatprep.subr.bf16.mxu0 %v1373_v50 }
  0x90   :  { %1282 = vmatpush3.bf16.msra.mxu1 %v1404_v62 }
  0x91   :  { %1283 = vmatprep.subr.bf16.mxu1 %v1405_v63 }
  0x92   :  { %1264 = vmatpush3.bf16.msra.mxu0 %v1373_v50 }
  0x93   :  { %1265 = vmatprep.subr.bf16.mxu0 %v1374_v53 }
  0x94   :  { %1284 = vmatpush3.bf16.msra.mxu1 %v1405_v63 }
  0x95   :  { %1285 = vmatprep.subr.bf16.mxu1 %v1406_v0 }
  0x96   :  { %1266 = vmatpush3.bf16.msra.mxu0 %v1374_v53 }
  0x98   :  { %1286 = vmatpush3.bf16.msra.mxu1 %v1406_v0 }
  0x99   :  { %1268 = vmatmul.mubr.bf16.vlgmr.msra.gmra.mxu0 %v594_v56  ;;  %v1194_v56 = vld [vmem:[%s1871_s5] ss:$0 sm:$0xff] }
 0x139   :  { %v399_v6 = vpop.f32.mrf.mxu0  ;;  %v452_v45 = vpop.f32.mrf.mxu1 }
 0x13a   :  { %v1757_v9 = vadd.f32 %v399_v6, %v188_v5  ;;  %v1785_v47 = vadd.f32 %v452_v45, %v196_v44 }
 0x13b   :  { %v401_v8 = vpop.f32.mrf.mxu0  ;;  %v454_v48 = vpop.f32.mrf.mxu1 }
 0x13c   :  { %v1186_v16 = vadd.f32 -1.0, %v1757_v9  ;;  %v1765_v18 = vadd.f32 %v401_v8, %v192_v11  ;;  %v1190_v49 = vadd.f32 -1.0, %v1785_v47  ;;  %v1788_v50 = vadd.f32 %v454_v48, %v200_v46 }
 0x13d   :  { %v403_v10 = vpop.f32.mrf.mxu0  ;;  %v456_v51 = vpop.f32.mrf.mxu1 }
 0x13e   :  { %v1759_v12 = vadd.f32 %v403_v10, %v188_v5  ;;  %v475_v25 = vmul.f32 %v1186_v16, %v1186_v16  ;;  %v530_v27 = vmul.f32 %v1765_v18, %v1765_v18  ;;  %v1790_v52 = vadd.f32 %v456_v51, %v196_v44 }
 0x13f   :  { %v405_v13 = vpop.f32.mrf.mxu0  ;;  %v458_v53 = vpop.f32.mrf.mxu1  ;;  %v504_v57 = vmul.f32 %v1190_v49, %v1190_v49  ;;  %v556_v58 = vmul.f32 %v1788_v50, %v1788_v50 }
 0x140   :  { %v1187_v14 = vadd.f32 -1.0, %v1759_v12  ;;  %v1762_v15 = vadd.f32 %v405_v13, %v192_v11  ;;  %v1191_v54 = vadd.f32 -1.0, %v1790_v52  ;;  %v1793_v55 = vadd.f32 %v458_v53, %v200_v46 }
 0x141   :  { %v409_v17 = vpop.f32.mrf.mxu0  ;;  %v462_v59 = vpop.f32.mrf.mxu1 }
 0x142   :  { %v1767_v19 = vadd.f32 %v409_v17, %v188_v5  ;;  %v476_v21 = vmul.f32 %v1187_v14, %v1187_v14  ;;  %v531_v22 = vmul.f32 %v1762_v15, %v1762_v15  ;;  %v505_v60 = vmul.f32 %v1191_v54, %v1191_v54 }
 0x143   :  { %v411_v20 = vpop.f32.mrf.mxu0  ;;  %v557_v61 = vmul.f32 %v1793_v55, %v1793_v55  ;;  %v1802_v62 = vadd.f32 %v462_v59, %v196_v44  ;;  %v464_v0 = vpop.f32.mrf.mxu1 }
 0x144   :  { %v1188_v23 = vadd.f32 -1.0, %v1767_v19  ;;  %v1772_v24 = vadd.f32 %v411_v20, %v192_v11  ;;  %v534_v34 = vadd.f32 %v531_v22, %v530_v27  ;;  %v479_v36 = vadd.f32 %v476_v21, %v475_v25 }
 0x145   :  { %v413_v26 = vpop.f32.mrf.mxu0  ;;  %v1192_v2 = vadd.f32 -1.0, %v1802_v62  ;;  %v560_v6 = vadd.f32 %v557_v61, %v556_v58  ;;  %v1805_v7 = vadd.f32 %v464_v0, %v200_v46  ;;  %v466_v8 = vpop.f32.mrf.mxu1 }
 0x146   :  { %v477_v28 = vmul.f32 %v1188_v23, %v1188_v23  ;;  %v532_v29 = vmul.f32 %v1772_v24, %v1772_v24  ;;  %v1778_v30 = vadd.f32 %v413_v26, %v188_v5  ;;  %v508_v5 = vadd.f32 %v505_v60, %v504_v57 }
 0x147   :  { %v415_v31 = vpop.f32.mrf.mxu0  ;;  %v506_v13 = vmul.f32 %v1192_v2, %v1192_v2  ;;  %v1807_v14 = vadd.f32 %v466_v8, %v196_v44  ;;  %v558_v17 = vmul.f32 %v1805_v7, %v1805_v7  ;;  %v468_v20 = vpop.f32.mrf.mxu1 }
 0x148   :  { %v1780_v33 = vadd.f32 %v415_v31, %v192_v11  ;;  %v1189_v35 = vadd.f32 -1.0, %v1778_v30  ;;  %v535_v38 = vadd.f32 %v534_v34, %v532_v29  ;;  %v480_v40 = vadd.f32 %v479_v36, %v477_v28 }
 0x149   :  { %v1193_v23 = vadd.f32 -1.0, %v1807_v14  ;;  %v509_v26 = vadd.f32 %v508_v5, %v506_v13  ;;  %v1812_v27 = vadd.f32 %v468_v20, %v200_v46  ;;  %v561_v28 = vadd.f32 %v560_v6, %v558_v17 }
 0x14a   :  { %v533_v37 = vmul.f32 %v1780_v33, %v1780_v33  ;;  %v478_v39 = vmul.f32 %v1189_v35, %v1189_v35 }
 0x14b   :  { %v507_v35 = vmul.f32 %v1193_v23, %v1193_v23  ;;  %v559_v36 = vmul.f32 %v1812_v27, %v1812_v27 }
 0x14c   :  { %v536_v42 = vadd.f32 %v535_v38, %v533_v37  ;;  %v481_v43 = vadd.f32 %v480_v40, %v478_v39 }
 0x14d   :  { %v510_v40 = vadd.f32 %v509_v26, %v507_v35  ;;  %v562_v41 = vadd.f32 %v561_v28, %v559_v36 }
 0x14e   :  { %537 = vadd.xlane.f32.xlu1 %v536_v42  ;;  %482 = vadd.xlane.f32.xlu0 %v481_v43 }
 0x152   :  { %511 = vadd.xlane.f32.xlu0 %v510_v40  ;;  %563 = vadd.xlane.f32.xlu1 %v562_v41 }
 0x159   :  { %v1269_v63 = vpop.f32.mrf.mxu0 }
 0x15a   :  { %v709_v1 = vadd.f32 %v1269_v63, %v1194_v56 }
 0x15b   :  { %v700_v4 = vpop.f32.mrf.mxu0 }
 0x15c   :  { %v717_v10 = vmul.f32 0.2, %v709_v1  ;;  %v701_v11 = vadd.f32 %v1194_v56, %v700_v4 }
 0x15d   :  { %v1270_v16 = vpop.f32.mrf.mxu0 }
 0x15e   :  { %v715_v21 = vmul.f32 0.2, %v701_v11  ;;  %v712_v22 = vadd.f32 %v1270_v16, %v1194_v56  ;;  %v721_v29 = vmax.f32 %v709_v1, %v717_v10  ;;  %v757_v16 = vld [vmem:[%s1876_s10] sm:$0x1] }
 0x15f   :  { %v703_v25 = vpop.f32.mrf.mxu0 }
 0x160   :  { %v719_v31 = vmax.f32 %v701_v11, %v715_v21  ;;  %v718_v32 = vmul.f32 0.2, %v712_v22  ;;  %v704_v34 = vadd.f32 %v1194_v56, %v703_v25  ;;  %v725_v42 = vmul.f32 %v721_v29, %v1767_v19  ;;  %v761_v21 = vld [vmem:[%s1877_s11] sm:$0x1] }
 0x162   :  { %v723_v37 = vmul.f32 %v719_v31, %v1757_v9  ;;  %v722_v38 = vmax.f32 %v712_v22, %v718_v32  ;;  %v716_v39 = vmul.f32 0.2, %v704_v34  ;;  %v729_v48 = vadd.f32 %v725_v42, %v1772_v24 }
 0x164   :  { %v720_v43 = vmax.f32 %v704_v34, %v716_v39  ;;  %v727_v44 = vadd.f32 %v723_v37, %v1765_v18  ;;  %v726_v45 = vmul.f32 %v722_v38, %v1778_v30  ;;  %v742_v56 = vmul.f32 %v729_v48, %v729_v48 }
 0x166   :  { %v724_v46 = vmul.f32 %v720_v43, %v1759_v12  ;;  %v740_v9 = vmul.f32 %v727_v44, %v727_v44  ;;  %v730_v51 = vadd.f32 %v726_v45, %v1780_v33 }
 0x168   :  { %v728_v49 = vadd.f32 %v724_v46, %v1762_v15  ;;  %v743_v58 = vmul.f32 %v730_v51, %v730_v51 }
 0x16a   :  { %v731_v53 = vadd.f32 %v728_v49, %v727_v44  ;;  %v741_v54 = vmul.f32 %v728_v49, %v728_v49 }
 0x16c   :  { %v732_v19 = vadd.f32 %v731_v53, %v729_v48  ;;  %v744_v57 = vadd.f32 %v741_v54, %v740_v9 }
 0x16e   :  { %v733_v59 = vadd.f32 %v732_v19, %v730_v51  ;;  %v745_v60 = vadd.f32 %v744_v57, %v742_v56  ;;  %v1407_v57 = vld [vmem:[#allocation12 + $0x38] sm:$0xff]  }
 0x16f   :  { %1291 = vmatprep.subr.bf16.mxu0 %v1407_v57 }
 0x170   :  { %v734_v18 = vrot.slane %v733_v59, 4  ;;  %v746_v61 = vadd.f32 %v745_v60, %v743_v58  ;;  %v1408_v58 = vld [vmem:[#allocation12 + $0x30] sm:$0xff]   ;;  %1292 = vmatpush3.bf16.msra.mxu0 %v1407_v57 }
 0x171   :  { %1293 = vmatprep.subr.bf16.mxu0 %v1408_v58 }
 0x172   :  { %v735_v30 = vadd.f32 %v734_v18, %v733_v59  ;;  %v747_v63 = vrot.slane %v746_v61, 4  ;;  %v1409_v18 = vld [vmem:[#allocation12 + $0x28] sm:$0xff]  }
 0x174   :  { %v736_v12 = vrot.slane %v735_v30, 2  ;;  %v748_v0 = vadd.f32 %v747_v63, %v746_v61  ;;  %1294 = vmatpush3.bf16.msra.mxu0 %v1408_v58  ;;  %v1410_v63 = vld [vmem:[#allocation12 + $0x20] sm:$0xff]  }
 0x175   :  { %1295 = vmatprep.subr.bf16.mxu0 %v1409_v18 }
 0x176   :  { %v737_v24 = vadd.f32 %v736_v12, %v735_v30  ;;  %v749_v1 = vrot.slane %v748_v0, 2 }
 0x178   :  { %v738_v15 = vrot.slane %v737_v24, 1  ;;  %v750_v2 = vadd.f32 %v749_v1, %v748_v0  ;;  %1296 = vmatpush3.bf16.msra.mxu0 %v1409_v18  ;;  %v1411_v0 = vld [vmem:[#allocation12 + $0x18] sm:$0xff]  }
 0x179   :  { %1297 = vmatprep.subr.bf16.mxu0 %v1410_v63 }
 0x17a   :  { %v739_v4 = vadd.f32 %v738_v15, %v737_v24  ;;  %v751_v33 = vrot.slane %v750_v2, 1  ;;  %v1412_v15 = vld [vmem:[#allocation12 + $0x10] sm:$0xff]  }
 0x17c   :  { %v752_v5 = vadd.f32 %v751_v33, %v750_v2  ;;  %v753_v6 = vmul.f32 0.03125, %v739_v4  ;;  %1298 = vmatpush3.bf16.msra.mxu0 %v1410_v63  ;;  %v1413_v4 = vld [vmem:[#allocation12 + $0x8] sm:$0xff]  }
 0x17d   :  { %1299 = vmatprep.subr.bf16.mxu0 %v1411_v0 }
 0x17e   :  { %v754_v8 = vmul.f32 0.03125, %v752_v5  ;;  %v755_v10 = vmul.f32 %v753_v6, %v753_v6 }
 0x180   :  { %v756_v11 = vsub.f32 %v754_v8, %v755_v10  ;;  %1300 = vmatpush3.bf16.msra.mxu0 %v1411_v0  ;;  %v1414_v8 = vld [vmem:[#allocation12] sm:$0xff]  }
 0x181   :  { %1301 = vmatprep.subr.bf16.mxu0 %v1412_v15 }
 0x182   :  { %v758_v13 = vadd.f32 0.8, %v756_v11 }
 0x184   :  { %1415 = vrsqrt.f32 %v758_v13  ;;  %1302 = vmatpush3.bf16.msra.mxu0 %v1412_v15 }
 0x185   :  { %1303 = vmatprep.subr.bf16.mxu0 %v1413_v4 }
 0x188   :  { %1304 = vmatpush3.bf16.msra.mxu0 %v1413_v4 }
 0x189   :  { %1305 = vmatprep.subr.bf16.mxu0 %v1414_v8 }
 0x18c   :  { %1306 = vmatpush3.bf16.msra.mxu0 %v1414_v8 }
 0x191   :  { %v1416_v17 = vpop.eup %1415 }
 0x192   :  { %v760_v20 = vmul.f32 %v1416_v17, %v757_v16 }
 0x194   :  { %v762_v22 = vmul.f32 %v760_v20, %v753_v6  ;;  %v768_v23 = vrot.slane %v760_v20, %v1751_v3 }
 0x196   :  { %v763_v25 = vsub.f32 %v761_v21, %v762_v22  ;;  %v770_v26 = vmul.f32 %v768_v23, %v727_v44  ;;  %v771_v28 = vmul.f32 %v768_v23, %v728_v49  ;;  %v772_v31 = vmul.f32 %v768_v23, %v729_v48  ;;  %v1203_v21 = vld [vmem:[%s1873_s7] ss:$0 sm:$0xff] }
 0x197   :  { %v773_v32 = vmul.f32 %v768_v23, %v730_v51 }
 0x198   :  { %v778_v29 = vrot.slane %v763_v25, %v1751_v3 }
 0x19a   :  { %v780_v34 = vadd.f32 %v778_v29, %v770_v26  ;;  %v781_v35 = vadd.f32 %v778_v29, %v771_v28  ;;  %v782_v36 = vadd.f32 %v778_v29, %v772_v31  ;;  %v783_v37 = vadd.f32 %v778_v29, %v773_v32 }
 0x19c   :  { %v784_v38 = vmul.f32 0.2, %v780_v34  ;;  %v785_v39 = vmul.f32 0.2, %v781_v35  ;;  %v786_v40 = vmul.f32 0.2, %v782_v36 }
 0x19d   :  { %v787_v41 = vmul.f32 0.2, %v783_v37 }
 0x19e   :  { %v788_v42 = vmax.f32 %v780_v34, %v784_v38  ;;  %v789_v43 = vmax.f32 %v781_v35, %v785_v39  ;;  %v790_v45 = vmax.f32 %v782_v36, %v786_v40 }
 0x19f   :  { %v791_v46 = vmax.f32 %v783_v37, %v787_v41 }
 0x1a0   :  { %v792_v9 = vpack.c.bf16 %v789_v43, %v788_v42 }
 0x1a1   :  { %v793_v53 = vpack.c.bf16 %v791_v46, %v790_v45 }
 0x1a2   :  { %1287 = vmatprep.mubr.bf16.mxu1 %v792_v9 }
 0x1a3   :  { %1288 = vmatmul.mubr.bf16.vlgmr.msra.gmra.mxu1 %v793_v53 }
 0x1d7   :  { %v483_v44 = vpop.xlane.xlu0 %482  ;;  %v538_v13 = vpop.xlane.xlu1 %537 }
 0x1d8   :  { %v484_v49 = vrot.slane %v483_v44, 4  ;;  %v539_v16 = vrot.slane %v538_v13, 4 }
 0x1da   :  { %v485_v48 = vadd.f32 %v484_v49, %v483_v44  ;;  %v540_v20 = vadd.f32 %v539_v16, %v538_v13 }
 0x1db   :  { %v512_v59 = vpop.xlane.xlu0 %511 }
 0x1dc   :  { %v486_v51 = vrot.slane %v485_v48, 2  ;;  %v513_v60 = vrot.slane %v512_v59, 4  ;;  %v541_v22 = vrot.slane %v540_v20, 2 }
 0x1de   :  { %v487_v54 = vadd.f32 %v486_v51, %v485_v48  ;;  %v514_v30 = vadd.f32 %v513_v60, %v512_v59  ;;  %v542_v32 = vadd.f32 %v541_v22, %v540_v20  ;;  %v960_v22 = vld [vmem:[#allocation14] sm:$0x1] }
 0x1e0   :  { %v488_v56 = vrot.slane %v487_v54, 1  ;;  %v515_v12 = vrot.slane %v514_v30, 2  ;;  %v543_v45 = vrot.slane %v542_v32, 1 }
 0x1e2   :  { %v489_v19 = vadd.f32 %v488_v56, %v487_v54  ;;  %v516_v24 = vadd.f32 %v515_v12, %v514_v30  ;;  %v544_v54 = vadd.f32 %v543_v45, %v542_v32 }
 0x1e4   :  { %1311 = vpush %v489_v19  ;;  %v517_v1 = vrot.slane %v516_v24, 1 }
 0x1e6   :  { %v518_v6 = vadd.f32 %v517_v1, %v516_v24 }
 0x215   :  { %s1312_s10 = spop %1311 }
 0x216   :  { %v491_v61 = vstv %s1312_s10 }
 0x217   :  { %1417 = vrsqrt.f32 %v491_v61  ;;  %vm494_vm0 = vcmp.eq.f32.partialorder %v491_v61, inf  ;;  %v497_v5 = vand.u32 2147483648, %v491_v61  ;;  %vm496_vm1 = vcmp.eq.f32.partialorder %v491_v61, 0.0 }
 0x224   :  { %v1418_v2 = vpop.eup %1417 }
 0x225   :  { %v493_v33 = vmul.f32 %v1418_v2, %v491_v61 }
 0x227   :  { %v495_v10 = vsel %vm494_vm0, %v491_v61, %v493_v33 }
 0x228   :  { %v498_v11 = vsel %vm496_vm1, %v497_v5, %v495_v10 }
 0x229   :  { %1313 = vpush %v498_v11 }
 0x22a   :  { %1315 = vpush %v518_v6 }
 0x25a   :  { %s1832_s11 = spop %1313 }
 0x25b   :  { %s1316_s17 = spop %1315 }
 0x25c   :  { %v520_v17 = vstv %s1316_s17 }
 0x25d   :  { %1419 = vrsqrt.f32 %v520_v17  ;;  %vm523_vm2 = vcmp.eq.f32.partialorder %v520_v17, inf  ;;  %v526_v43 = vand.u32 2147483648, %v520_v17  ;;  %vm525_vm3 = vcmp.eq.f32.partialorder %v520_v17, 0.0 }
 0x263   :  { %v1289_v23 = vpop.f32.mrf.mxu1 }
 0x264   :  { %v908_v25 = vadd.f32 %v1289_v23, %v1203_v21  ;;  %v564_v23 = vpop.xlane.xlu1 %563 }
 0x265   :  { %v899_v26 = vpop.f32.mrf.mxu1 }
 0x266   :  { %v916_v28 = vmul.f32 0.2, %v908_v25  ;;  %v900_v29 = vadd.f32 %v1203_v21, %v899_v26 }
 0x267   :  { %v1290_v31 = vpop.f32.mrf.mxu1 }
 0x268   :  { %v914_v34 = vmul.f32 0.2, %v900_v29  ;;  %v911_v35 = vadd.f32 %v1290_v31, %v1203_v21  ;;  %v920_v38 = vmax.f32 %v908_v25, %v916_v28 }
 0x269   :  { %v902_v36 = vpop.f32.mrf.mxu1 }
 0x26a   :  { %v1420_v37 = vpop.eup %1419  ;;  %v918_v39 = vmax.f32 %v900_v29, %v914_v34  ;;  %v917_v40 = vmul.f32 0.2, %v911_v35  ;;  %v903_v41 = vadd.f32 %v1203_v21, %v902_v36  ;;  %v924_v49 = vmul.f32 %v920_v38, %v1802_v62 }
 0x26b   :  { %v522_v42 = vmul.f32 %v1420_v37, %v520_v17  ;;  %v565_v29 = vrot.slane %v564_v23, 4 }
 0x26c   :  { %v922_v46 = vmul.f32 %v918_v39, %v1785_v47  ;;  %v921_v9 = vmax.f32 %v911_v35, %v917_v40  ;;  %v915_v53 = vmul.f32 0.2, %v903_v41  ;;  %v928_v58 = vadd.f32 %v924_v49, %v1805_v7 }
 0x26d   :  { %v524_v44 = vsel %vm523_vm2, %v520_v17, %v522_v42  ;;  %v956_v17 = vld [vmem:[%s1878_s12] sm:$0x1] }
 0x26e   :  { %v919_v48 = vmax.f32 %v903_v41, %v915_v53  ;;  %v527_v51 = vsel %vm525_vm3, %v526_v43, %v524_v44  ;;  %v926_v56 = vadd.f32 %v922_v46, %v1788_v50  ;;  %v925_v19 = vmul.f32 %v921_v9, %v1807_v14 }
 0x26f   :  { %1317 = vpush %v527_v51  ;;  %v941_v61 = vmul.f32 %v928_v58, %v928_v58  ;;  %v566_v41 = vadd.f32 %v565_v29, %v564_v23 }
 0x270   :  { %v923_v57 = vmul.f32 %v919_v48, %v1790_v52  ;;  %1319 = vpush %v544_v54  ;;  %v939_v59 = vmul.f32 %v926_v56, %v926_v56  ;;  %v929_v60 = vadd.f32 %v925_v19, %v1812_v27 }
 0x271   :  { %v567_v48 = vrot.slane %v566_v41, 2 }
 0x272   :  { %v927_v47 = vadd.f32 %v923_v57, %v1793_v55  ;;  %v942_v12 = vmul.f32 %v929_v60, %v929_v60 }
 0x274   :  { %v930_v18 = vadd.f32 %v927_v47, %v926_v56  ;;  %v940_v62 = vmul.f32 %v927_v47, %v927_v47 }
 0x276   :  { %v931_v30 = vadd.f32 %v930_v18, %v928_v58  ;;  %v943_v63 = vadd.f32 %v940_v62, %v939_v59 }
 0x278   :  { %v932_v50 = vadd.f32 %v931_v30, %v929_v60  ;;  %v944_v0 = vadd.f32 %v943_v63, %v941_v61 }
 0x27a   :  { %v933_v14 = vrot.slane %v932_v50, 4  ;;  %v945_v24 = vadd.f32 %v944_v0, %v942_v12  ;;  %v1212_v0 = vld [vmem:[%s1875_s9] ss:$0 sm:$0xff] }
 0x27c   :  { %v934_v52 = vadd.f32 %v933_v14, %v932_v50  ;;  %v946_v1 = vrot.slane %v945_v24, 4 }
 0x27e   :  { %v935_v15 = vrot.slane %v934_v52, 2  ;;  %v947_v2 = vadd.f32 %v946_v1, %v945_v24 }
 0x280   :  { %v936_v7 = vadd.f32 %v935_v15, %v934_v52  ;;  %v948_v4 = vrot.slane %v947_v2, 2 }
 0x282   :  { %v937_v55 = vrot.slane %v936_v7, 1  ;;  %v949_v33 = vadd.f32 %v948_v4, %v947_v2 }
 0x284   :  { %v938_v5 = vadd.f32 %v937_v55, %v936_v7  ;;  %v950_v27 = vrot.slane %v949_v33, 1 }
 0x286   :  { %v951_v6 = vadd.f32 %v950_v27, %v949_v33  ;;  %v952_v8 = vmul.f32 0.03125, %v938_v5 }
 0x288   :  { %v953_v10 = vmul.f32 0.03125, %v951_v6  ;;  %v954_v11 = vmul.f32 %v952_v8, %v952_v8 }
 0x28a   :  { %v955_v13 = vsub.f32 %v953_v10, %v954_v11 }
 0x28c   :  { %v957_v16 = vadd.f32 0.8, %v955_v13 }
 0x28e   :  { %1421 = vrsqrt.f32 %v957_v16 }
 0x29b   :  { %v1422_v20 = vpop.eup %1421 }
 0x29c   :  { %v959_v21 = vmul.f32 %v1422_v20, %v956_v17 }
 0x29e   :  { %v961_v25 = vmul.f32 %v959_v21, %v952_v8  ;;  %v967_v26 = vrot.slane %v959_v21, %v1751_v3 }
 0x2a0   :  { %v962_v28 = vsub.f32 %v960_v22, %v961_v25  ;;  %s1849_s22 = spop %1317  ;;  %v969_v31 = vmul.f32 %v967_v26, %v926_v56  ;;  %v970_v32 = vmul.f32 %v967_v26, %v927_v47  ;;  %v971_v35 = vmul.f32 %v967_v26, %v928_v58 }
 0x2a1   :  { %s1320_s0 = spop %1319  ;;  %v972_v37 = vmul.f32 %v967_v26, %v929_v60  ;;  %v568_v56 = vadd.f32 %v567_v48, %v566_v41  ;;  %s529_s12 = sadd.f32 %s1849_s22, %s1832_s11 }
 0x2a2   :  { %v977_v34 = vrot.slane %v962_v28, %v1751_v3  ;;  %v546_v36 = vstv %s1320_s0 }
 0x2a3   :  { %1423 = vrsqrt.f32 %v546_v36  ;;  %v569_v57 = vrot.slane %v568_v56, 1  ;;  %vm549_vm4 = vcmp.eq.f32.partialorder %v546_v36, inf  ;;  %v552_v47 = vand.u32 2147483648, %v546_v36 }
 0x2a4   :  { %v979_v38 = vadd.f32 %v977_v34, %v969_v31  ;;  %v980_v39 = vadd.f32 %v977_v34, %v970_v32  ;;  %v981_v40 = vadd.f32 %v977_v34, %v971_v35  ;;  %v982_v42 = vadd.f32 %v977_v34, %v972_v37 }
 0x2a5   :  { %vm551_vm5 = vcmp.eq.f32.partialorder %v546_v36, 0.0  ;;  %v570_v18 = vadd.f32 %v569_v57, %v568_v56 }
 0x2a6   :  { %v983_v43 = vmul.f32 0.2, %v979_v38  ;;  %v984_v45 = vmul.f32 0.2, %v980_v39  ;;  %v985_v46 = vmul.f32 0.2, %v981_v40 }
 0x2a7   :  { %v986_v9 = vmul.f32 0.2, %v982_v42 }
 0x2a8   :  { %v987_v53 = vmax.f32 %v979_v38, %v983_v43  ;;  %v988_v44 = vmax.f32 %v980_v39, %v984_v45  ;;  %v989_v49 = vmax.f32 %v981_v40, %v985_v46 }
 0x2a9   :  { %v990_v51 = vmax.f32 %v982_v42, %v986_v9 }
 0x2aa   :  { %v991_v54 = vpack.c.bf16 %v988_v44, %v987_v53 }
 0x2ab   :  { %v992_v3 = vpack.c.bf16 %v990_v51, %v989_v49 }
 0x2ac   :  { %1307 = vmatprep.mubr.bf16.mxu0 %v991_v54 }
 0x2ad   :  { %1308 = vmatmul.mubr.bf16.vlgmr.msra.gmra.mxu0 %v992_v3 }
 0x2b0   :  { %v1424_v19 = vpop.eup %1423 }
 0x2b1   :  { %v548_v58 = vmul.f32 %v1424_v19, %v546_v36 }
 0x2b3   :  { %v550_v59 = vsel %vm549_vm4, %v546_v36, %v548_v58 }
 0x2b4   :  { %v553_v60 = vsel %vm551_vm5, %v552_v47, %v550_v59 }
 0x2b5   :  { %1321 = vpush %v553_v60 }
 0x2b6   :  { %1323 = vpush %v570_v18 }
 0x2e6   :  { %s1322_s1 = spop %1321 }
 0x2e7   :  { %s555_s25 = sadd.f32 %s1322_s1, %s529_s12  ;;  %s1324_s4 = spop %1323 }
 0x2e8   :  { %v572_v62 = vstv %s1324_s4 }
 0x2e9   :  { %1425 = vrsqrt.f32 %v572_v62  ;;  %vm575_vm6 = vcmp.eq.f32.partialorder %v572_v62, inf  ;;  %v578_v63 = vand.u32 2147483648, %v572_v62  ;;  %vm577_vm7 = vcmp.eq.f32.partialorder %v572_v62, 0.0 }
 0x2f6   :  { %v1426_v61 = vpop.eup %1425 }
 0x2f7   :  { %v574_v30 = vmul.f32 %v1426_v61, %v572_v62 }
 0x2f9   :  { %v576_v12 = vsel %vm575_vm6, %v572_v62, %v574_v30 }
 0x2fa   :  { %v579_v50 = vsel %vm577_vm7, %v578_v63, %v576_v12 }
 0x2fb   :  { %1325 = vpush %v579_v50 }
 0x32c   :  { %s1326_s21 = spop %1325 }
 0x32d   :  { %s581_s2 = sadd.f32 %s1326_s21, %s555_s25 }
 0x32f   :  { %s582_s26 = smul.f32 0.25, %s581_s2 }
 0x331   :  { %584 = sst [smem:[#allocation16]] %s582_s26 }
 0x332   :  { %1140 = dma.smem_to_hbm %s1629_s27, 16, %s1881_s15, [#allocation5]  }
 0x333   :  { %s1630_s15 = smov [#allocation15]  }
 0x334   :  { %s1126_s28 = sshll.u32 %s1630_s15, 4  ;;  %s1127_s28 = int_to_ptr.vmem [resolvable:$true] %s1126_s28 }
 0x335   :  { %s1583_s9 = scalar_lea.vmem %s1127_s28, 512  ;;  %p1588_p8 = scmp.lt.s32.totalorder %s1127_s28, %s1127_s28 }
 0x336   :  { %p1584_p7 = scmp.ne.s32.totalorder %s1127_s28, %s1583_s9  ;;  %p1589_p9 = scmp.lt.s32.totalorder %s1583_s9, %s1583_s9 }
 0x338   :  { %p1590_p10 = por %p1589_p9, %p1588_p8 }
 0x33a   :  { %p1591_p11 = pnand %p1590_p10, %p1584_p7 }
 0x36d   :  { %v1309_v14 = vpop.f32.mrf.mxu0 }
 0x36e   :  { %v1107_v24 = vadd.f32 %v1309_v14, %v1212_v0 }
 0x36f   :  { %v1098_v52 = vpop.f32.mrf.mxu0 }
 0x370   :  { %1427 = vtanh.f32 %v1107_v24  ;;  %v1099_v1 = vadd.f32 %v1212_v0, %v1098_v52 }
 0x371   :  { %v1310_v15 = vpop.f32.mrf.mxu0 }
 0x372   :  { %1429 = vtanh.f32 %v1099_v1  ;;  %v1110_v2 = vadd.f32 %v1310_v15, %v1212_v0 }
 0x373   :  { %v1101_v7 = vpop.f32.mrf.mxu0 }
 0x374   :  { %1431 = vtanh.f32 %v1110_v2  ;;  %v1102_v4 = vadd.f32 %v1212_v0, %v1101_v7 }
 0x376   :  { %1433 = vtanh.f32 %v1102_v4 }
 0x37d   :  { %v1428_v55 = vpop.eup %1427 }
 0x37e   :  { %1119 = vst [vmem:[#allocation15 + $0x10] sm:$0xff] %v1428_v55 }
 0x37f   :  { %v1430_v33 = vpop.eup %1429 }
 0x380   :  { %1117 = vst [vmem:[#allocation15] sm:$0xff] %v1430_v33 }
 0x381   :  { %v1432_v5 = vpop.eup %1431 }
 0x382   :  { %1120 = vst [vmem:[#allocation15 + $0x18] sm:$0xff] %v1432_v5 }
 0x383   :  { %v1434_v27 = vpop.eup %1433 }
 0x384   :  { %1118 = vst [vmem:[#allocation15 + $0x8] sm:$0xff] %v1434_v27 }
 0x385   :  { %1594 = shalt.err (!%p1591_p11)
}
 0x386   :  { %1132 = dma.vmem_to_hbm [thread:$0]  %s1127_s28, 512, %s1880_s14, [#allocation4], %s1617_s23, %s1617_s23, %s1618_s24  }
 0x387   :  { %1611 = dma.done.wait [#allocation4], 512  }
 0x388   :  { %1612 = vsyncadd [#allocation4], 4294966784 }
 0x389   :  { %1613 = dma.done.wait [#allocation5], 16  }
 0x38a   :  { %1614 = vsyncadd [#allocation5], 4294967280 }
 0x38b   :  { %1147 = sfence }
 0x38c   :  { %1148 = vsyncpa [#allocation3], 1 }
 0x38d   :  { %1149 = vsyncpa [#allocation7], 1 }
 0x38e   :  { %1150 = vsyncpa [#allocation10], 1 }
 0x38f   :  { %1151 = vsyncpa [#allocation13], 1 }
 0x390   :  { %1152 = vsyncpa [#allocation4], 1 }
 0x391   :  { %1153 = vsyncpa [#allocation5], 1 }

</bundles_post_ra>
